<compile_context>
chip_gen: v7x
topology: tpu7x:2x2x1
jax: 0.10.0
libtpu: 0.0.40
codegen_flags: <defaults>
</compile_context>

<pallas_src>
import jax
import jax.numpy as jnp
from jax.experimental import pallas as pl
from jax.experimental.pallas import tpu as pltpu


def _round_up(n, m):
    return ((n + m - 1) // m) * m


def mlp_kernel(x_ref, w1_ref, b1_ref, w2_ref, b2_ref, w3_ref, b3_ref, o_ref):
    # x tile streamed in its stored dtype; bf16 cast for the MXU is a VPU op
    # inside the kernel (no wrapper-side HBM round trip).
    x = x_ref[...].astype(jnp.bfloat16)                                    # (B, D)

    # Layer 1: bf16 MXU matmul, f32 accumulation; bias + ReLU in f32
    # (v5e VPU has no bf16).
    h1 = jnp.dot(x, w1_ref[...], preferred_element_type=jnp.float32)      # (B, 64)
    h1 = jnp.maximum(h1 + b1_ref[...], 0.0)

    # Layer 2.
    h2 = jnp.dot(h1.astype(jnp.bfloat16), w2_ref[...],
                 preferred_element_type=jnp.float32)                      # (B, 32)
    h2 = jnp.maximum(h2 + b2_ref[...], 0.0)

    # Layer 3 (out_features == 1): contract the 32-dim on the MXU with w3 as a
    # (1, 32) row -> lane-dense (1, B) output row directly (no XLU transpose).
    out = jax.lax.dot_general(
        w3_ref[...], h2.astype(jnp.bfloat16),
        dimension_numbers=(((1,), (1,)), ((), ())),
        preferred_element_type=jnp.float32,
    ) + b3_ref[...]                                                        # (1, B)
    o_ref[...] = out.astype(o_ref.dtype)


def _choose_block_b(batch):
    """Big tiles amortize per-step overhead; keep >=2 tiles when possible (v7x)."""
    bp = _round_up(max(batch, 1), 128)
    block_b = min(2048, bp)
    if block_b == bp and bp >= 256:
        block_b = _round_up(bp // 2, 128)   # >= 2 grid steps so both v7x TCs work
    return block_b


def trading_model_forward(x, params, *, block_b=None):
    """Fused forward pass. x: (B, D) float. Returns (B, 1) float32.

    block_b (rows per grid step) must be a multiple of 128 when given
    explicitly; the default picks up to 2048 rows while keeping >= 2 grid
    steps when the batch allows (v7x megacore). Lower block_b for very large
    input_size so the double-buffered x tile stays within scoped VMEM.
    """
    w1, b1, w2, b2, w3, b3 = params
    B, D = x.shape

    if block_b is None:
        block_b = _choose_block_b(B)
    assert block_b % 128 == 0, "block_b must be a multiple of 128"

    grid = pl.cdiv(B, block_b)
    resident = lambda i: (0, 0)             # weights/biases: same block every step

    out_row = pl.pallas_call(
        mlp_kernel,
        out_shape=jax.ShapeDtypeStruct((1, B), jnp.float32),
        grid_spec=pltpu.PrefetchScalarGridSpec(
            num_scalar_prefetch=0,
            grid=(grid,),
            in_specs=[
                pl.BlockSpec((block_b, D), lambda i: (i, 0)),   # x: streamed per tile
                pl.BlockSpec((D, 64), resident),                # w1 (in, out) bf16
                pl.BlockSpec((1, 64), resident),                # b1 f32
                pl.BlockSpec((64, 32), resident),               # w2 (in, out) bf16
                pl.BlockSpec((1, 32), resident),                # b2 f32
                pl.BlockSpec((1, 32), resident),                # w3 row bf16
                pl.BlockSpec((1, 1), resident),                 # b3 f32
            ],
            out_specs=pl.BlockSpec((1, block_b), lambda i: (0, i)),  # lane-dense row
        ),
        compiler_params=pltpu.CompilerParams(
            dimension_semantics=("parallel",),  # v7x: shard batch tiles across both TCs
        ),
    )(x, w1, b1, w2, b2, w3, b3)

    return out_row[0, :].reshape(B, 1)


def init_params(key, input_size):
    """Deterministic init matching nn.Linear (uniform +/- 1/sqrt(fan_in)).

    Weights stored as (in, out) in bf16 (VMEM-resident, fed to the bf16 MXU);
    layer-3 weight is kept as a (1, 32) bf16 row; biases stay f32.
    """
    ks = jax.random.split(key, 6)

    def linear(kw, kb, fan_in, fan_out):
        bound = 1.0 / jnp.sqrt(fan_in)
        w = jax.random.uniform(kw, (fan_in, fan_out), jnp.float32, -bound, bound)
        b = jax.random.uniform(kb, (1, fan_out), jnp.float32, -bound, bound)
        return w, b

    w1, b1 = linear(ks[0], ks[1], input_size, 64)
    w2, b2 = linear(ks[2], ks[3], 64, 32)
    w3, b3 = linear(ks[4], ks[5], 32, 1)
    return (
        w1.astype(jnp.bfloat16), b1,
        w2.astype(jnp.bfloat16), b2,
        w3.T.astype(jnp.bfloat16), b3,   # w3 stored as (1, 32) bf16 row
    )


if __name__ == "__main__":
    key = jax.random.PRNGKey(0)
    k_x, k_p = jax.random.split(key)

    batch, input_size = 256, 32
    x = jax.random.normal(k_x, (batch, input_size), dtype=jnp.float32)
    params = init_params(k_p, input_size)

    out = trading_model_forward(x, params)
    jax.block_until_ready(out)

    # Pure-JAX reference replicating the kernel's bf16-in / f32-accumulate numerics.
    w1, b1, w2, b2, w3, b3 = params
    xf = x.astype(jnp.bfloat16).astype(jnp.float32)
    h1 = jnp.maximum(xf @ w1.astype(jnp.float32) + b1, 0.0)
    h1 = h1.astype(jnp.bfloat16).astype(jnp.float32)
    h2 = jnp.maximum(h1 @ w2.astype(jnp.float32) + b2, 0.0)
    h2 = h2.astype(jnp.bfloat16).astype(jnp.float32)
    ref = h2 @ w3.astype(jnp.float32).T + b3

    assert out.shape == (batch, 1)
    err = float(jnp.max(jnp.abs(out - ref)))
    assert jnp.allclose(out, ref, atol=1e-3, rtol=1e-3), err

    print("KERNEL_OK")
</pallas_src>

<mosaic_0001>
module attributes {stable_mosaic.version = 11 : i64} {
  func.func @mlp_kernel(%arg0: i32, %arg1: memref<128x32xf32, #tpu.memory_space<vmem>>, %arg2: memref<32x64xbf16, #tpu.memory_space<vmem>>, %arg3: memref<1x64xf32, #tpu.memory_space<vmem>>, %arg4: memref<64x32xbf16, #tpu.memory_space<vmem>>, %arg5: memref<1x32xf32, #tpu.memory_space<vmem>>, %arg6: memref<1x32xbf16, #tpu.memory_space<vmem>>, %arg7: memref<1x1xf32, #tpu.memory_space<vmem>>, %arg8: memref<1x128xf32, #tpu.memory_space<vmem>>) attributes {dimension_semantics = [#tpu.dimension_semantics<parallel>], iteration_bounds = array<i64: 2>, scalar_prefetch = 0 : i64, scratch_operands = 0 : i64, tpu.core_type = #tpu.core_type<tc>, window_params = [{transform_indices = @transform_0, window_bounds = array<i64: 128, 32>}, {pipeline_mode = #tpu.pipeline_mode<synchronous>, transform_indices = @transform_1, window_bounds = array<i64: 32, 64>}, {pipeline_mode = #tpu.pipeline_mode<synchronous>, transform_indices = @transform_2, window_bounds = array<i64: 1, 64>}, {pipeline_mode = #tpu.pipeline_mode<synchronous>, transform_indices = @transform_3, window_bounds = array<i64: 64, 32>}, {pipeline_mode = #tpu.pipeline_mode<synchronous>, transform_indices = @transform_4, window_bounds = array<i64: 1, 32>}, {pipeline_mode = #tpu.pipeline_mode<synchronous>, transform_indices = @transform_5, window_bounds = array<i64: 1, 32>}, {pipeline_mode = #tpu.pipeline_mode<synchronous>, transform_indices = @transform_6, window_bounds = array<i64: 1, 1>}, {transform_indices = @transform_7, window_bounds = array<i64: 1, 128>}]} {
    %c0 = arith.constant 0 : index
    %c0_0 = arith.constant 0 : index
    %0 = vector.load %arg1[%c0, %c0_0] : memref<128x32xf32, #tpu.memory_space<vmem>>, vector<128x32xf32>
    %1 = arith.truncf %0 : vector<128x32xf32> to vector<128x32xbf16>
    %c0_1 = arith.constant 0 : index
    %c0_2 = arith.constant 0 : index
    %2 = vector.load %arg2[%c0_1, %c0_2] : memref<32x64xbf16, #tpu.memory_space<vmem>>, vector<32x64xbf16>
    %cst = arith.constant dense<0.000000e+00> : vector<128x64xf32>
    %3 = tpu.matmul %1, %2, %cst {dimension_numbers = #tpu.dot_dimension_numbers<[1], [0], [0], [1], [0, 0, 1, 1], [], []>} : vector<128x32xbf16>, vector<32x64xbf16>, vector<128x64xf32> -> vector<128x64xf32>
    %c0_3 = arith.constant 0 : index
    %c0_4 = arith.constant 0 : index
    %4 = vector.load %arg3[%c0_3, %c0_4] : memref<1x64xf32, #tpu.memory_space<vmem>>, vector<1x64xf32>
    %5 = vector.broadcast %4 : vector<1x64xf32> to vector<128x64xf32>
    %6 = arith.addf %3, %5 : vector<128x64xf32>
    %cst_5 = arith.constant 0.000000e+00 : f32
    %7 = vector.broadcast %cst_5 : f32 to vector<128x64xf32>
    %8 = arith.maximumf %6, %7 : vector<128x64xf32>
    %9 = arith.truncf %8 : vector<128x64xf32> to vector<128x64xbf16>
    %c0_6 = arith.constant 0 : index
    %c0_7 = arith.constant 0 : index
    %10 = vector.load %arg4[%c0_6, %c0_7] : memref<64x32xbf16, #tpu.memory_space<vmem>>, vector<64x32xbf16>
    %cst_8 = arith.constant dense<0.000000e+00> : vector<128x32xf32>
    %11 = tpu.matmul %9, %10, %cst_8 {dimension_numbers = #tpu.dot_dimension_numbers<[1], [0], [0], [1], [0, 0, 1, 1], [], []>} : vector<128x64xbf16>, vector<64x32xbf16>, vector<128x32xf32> -> vector<128x32xf32>
    %c0_9 = arith.constant 0 : index
    %c0_10 = arith.constant 0 : index
    %12 = vector.load %arg5[%c0_9, %c0_10] : memref<1x32xf32, #tpu.memory_space<vmem>>, vector<1x32xf32>
    %13 = vector.broadcast %12 : vector<1x32xf32> to vector<128x32xf32>
    %14 = arith.addf %11, %13 : vector<128x32xf32>
    %cst_11 = arith.constant 0.000000e+00 : f32
    %15 = vector.broadcast %cst_11 : f32 to vector<128x32xf32>
    %16 = arith.maximumf %14, %15 : vector<128x32xf32>
    %c0_12 = arith.constant 0 : index
    %c0_13 = arith.constant 0 : index
    %17 = vector.load %arg6[%c0_12, %c0_13] : memref<1x32xbf16, #tpu.memory_space<vmem>>, vector<1x32xbf16>
    %18 = arith.truncf %16 : vector<128x32xf32> to vector<128x32xbf16>
    %cst_14 = arith.constant dense<0.000000e+00> : vector<1x128xf32>
    %19 = tpu.matmul %17, %18, %cst_14 {dimension_numbers = #tpu.dot_dimension_numbers<[1], [1], [0], [0], [0, 0, 1, 0], [], []>} : vector<1x32xbf16>, vector<128x32xbf16>, vector<1x128xf32> -> vector<1x128xf32>
    %c0_15 = arith.constant 0 : index
    %c0_16 = arith.constant 0 : index
    %20 = vector.load %arg7[%c0_15, %c0_16] : memref<1x1xf32, #tpu.memory_space<vmem>>, vector<1x1xf32>
    %21 = vector.broadcast %20 : vector<1x1xf32> to vector<1x128xf32>
    %22 = arith.addf %19, %21 : vector<1x128xf32>
    %c0_17 = arith.constant 0 : index
    %c0_18 = arith.constant 0 : index
    %23 = vector.load %arg8[%c0_17, %c0_18] : memref<1x128xf32, #tpu.memory_space<vmem>>, vector<1x128xf32>
    tpu.vector_store %arg8[%c0_17, %c0_18], %22 {strides = array<i32>} : memref<1x128xf32, #tpu.memory_space<vmem>>, vector<1x128xf32>,
    return
  }
  func.func @transform_0(%arg0: i32) -> (i32, i32) {
    %c0_i32 = arith.constant 0 : i32
    %c0_i32_0 = arith.constant 0 : i32
    return %arg0, %c0_i32 : i32, i32
  }
  func.func @transform_1(%arg0: i32) -> (i32, i32) {
    %c0_i32 = arith.constant 0 : i32
    %c0_i32_0 = arith.constant 0 : i32
    %c0_i32_1 = arith.constant 0 : i32
    return %c0_i32, %c0_i32_0 : i32, i32
  }
  func.func @transform_2(%arg0: i32) -> (i32, i32) {
    %c0_i32 = arith.constant 0 : i32
    %c0_i32_0 = arith.constant 0 : i32
    %c0_i32_1 = arith.constant 0 : i32
    return %c0_i32, %c0_i32_0 : i32, i32
  }
  func.func @transform_3(%arg0: i32) -> (i32, i32) {
    %c0_i32 = arith.constant 0 : i32
    %c0_i32_0 = arith.constant 0 : i32
    %c0_i32_1 = arith.constant 0 : i32
    return %c0_i32, %c0_i32_0 : i32, i32
  }
  func.func @transform_4(%arg0: i32) -> (i32, i32) {
    %c0_i32 = arith.constant 0 : i32
    %c0_i32_0 = arith.constant 0 : i32
    %c0_i32_1 = arith.constant 0 : i32
    return %c0_i32, %c0_i32_0 : i32, i32
  }
  func.func @transform_5(%arg0: i32) -> (i32, i32) {
    %c0_i32 = arith.constant 0 : i32
    %c0_i32_0 = arith.constant 0 : i32
    %c0_i32_1 = arith.constant 0 : i32
    return %c0_i32, %c0_i32_0 : i32, i32
  }
  func.func @transform_6(%arg0: i32) -> (i32, i32) {
    %c0_i32 = arith.constant 0 : i32
    %c0_i32_0 = arith.constant 0 : i32
    %c0_i32_1 = arith.constant 0 : i32
    return %c0_i32, %c0_i32_0 : i32, i32
  }
  func.func @transform_7(%arg0: i32) -> (i32, i32) {
    %c0_i32 = arith.constant 0 : i32
    %c0_i32_0 = arith.constant 0 : i32
    return %c0_i32, %arg0 : i32, i32
  }
}

</mosaic_0001>

<bundles_post_ra>
// kernel: tpu_custom_call.1
= control target key start
LH: loop header
LB: loop body
LE: loop exit
PB: predicated region body
PF: predicated region fallthrough
CT: control target
= control target key end

     0   :  { %s1273_s0 = inlined_call_operand.vmem [shape: f32[256,32], index: 0, kind: input, shape index: {}]   ;;  %s1274_s1 = inlined_call_operand.vmem [shape: bf16[32,64], index: 1, kind: input, shape index: {}]   ;;  %s1275_s2 = inlined_call_operand.vmem [shape: f32[1,64], index: 2, kind: input, shape index: {}]   ;;  %s1276_s3 = inlined_call_operand.vmem [shape: bf16[64,32], index: 3, kind: input, shape index: {}]   ;;  %s1277_s4 = inlined_call_operand.vmem [shape: f32[1,32], index: 4, kind: input, shape index: {}]   ;;  %s1278_s5 = inlined_call_operand.vmem [shape: bf16[1,32], index: 5, kind: input, shape index: {}]   ;;  %s1279_s6 = inlined_call_operand.<no memory space> [shape: f32[1,1], index: 6, kind: input, shape index: {}]   ;;  %s1280_s7 = inlined_call_operand.hbm [shape: f32[1,256], index: 7, kind: output, shape index: {}]  }
   0x1   :  { %v12_v0 = vstv %s1279_s6 }
   0x2   :  { %13 = vst [vmem:[#allocation2] sm:$0x1] %v12_v0 }
   0x3   :  { %14 = vsyncpa [#allocation4], 0 }
   0x4   :  { %16 = vsyncpa [#allocation4 + $0x1], 0  ;;  %s1095_s26 = smov 0   ;;  %s1097_s27 = smov 0  }
   0x5   :  { %s1099_s28 = smov 0   ;;  %s1101_s29 = smov 0  }
   0x6 LB: > { %s805_s6 = sadd.s32 4294967295, %s1046_s29   ;;  %s806_s30 = sadd.s32 4294967294, %s1046_s29   ;;  %s1046_s29 = sphi %s1101_s29, %s1286_s29   ;;  %s1042_s28 = sphi %s1099_s28, %s1285_s28   ;;  %s1038_s27 = sphi %s1097_s27, %s1284_s27   ;;  %s1034_s26 = sphi %s1095_s26, %s1283_s26  }
   0x7   : > { %s1118_s8 = sadd.s32 1, %s1046_s29   ;;  %s181_s9 = sadd.s32 1, %s1042_s28 }
   0x8   : > { %s178_s10 = ssub.s32 %s1046_s29, %s1118_s8  ;;  %p191_p0 = scmp.ne.s32.totalorder %s1042_s28, %s1038_s27 }
   0x9   : > { %p179_p1 = scmp.eq.s32.totalorder %s178_s10, 0  ;;  %p192_p2 = scmp.eq.s32.totalorder %s805_s6, 1 }
   0xa   : > { %p197_p3 = scmp.ne.s32.totalorder %s1038_s27, %s1034_s26  ;;  %p198_p4 = scmp.eq.s32.totalorder %s806_s30, 1 }
   0xb   : > { %s1128_s11 = scalar_select %p179_p1, %s1042_s28, %s181_s9  }
   0xc   : > { %p1130_p5 = por %p192_p2, %p191_p0  ;;  %p1134_p6 = por %p198_p4, %p197_p3 }
   0xd   : > { %p809_p7 = scmp.ge.s32.totalorder %s1046_s29, 1  ;;  %p243_p8 = scmp.lt.s32.totalorder %s1046_s29, 3 }
   0xf   : > { %p244_p9 = pnand %p809_p7, %p243_p8 }
  0x10   : > { %v978_v1 = vld [vmem:[%s1274_s1] sm:$0xff] (!%p244_p9)   ;;  %s1143_s16 = sshll.u32 (!%p244_p9), %s805_s6, 4  ;;  %v979_v2 = vld [vmem:[%s1274_s1 + $0x8] sm:$0xff] (!%p244_p9)   ;;  %vm328_vm0 = vcmask (!%p244_p9), 261120   ;;  %v982_v18 = vld [vmem:[%s1276_s3 + $0x10] sm:$0xff] (!%p244_p9)   ;;  %vm513_vm1 = vcmask (!%p244_p9), 523264  }
  0x11   : > { %247 = sbr.rel (%p244_p9) target bundleno = 767 (0x2ff), region = 48  ;;  %p275_p10 = scmp.lt.s32.totalorder (!%p244_p9), %s1143_s16, 31  ;;  %871 = vmatprep.subr.bf16.mxu1 (!%p244_p9), %v978_v1  ;;  %v980_v3 = vld [vmem:[%s1276_s3] sm:$0xff] (!%p244_p9)   ;;  %v981_v13 = vld [vmem:[%s1276_s3 + $0x8] sm:$0xff] (!%p244_p9)   ;;  %v983_v30 = vld [vmem:[%s1276_s3 + $0x18] sm:$0xff] (!%p244_p9)   ;;  %vm1049_vm2 = vmmov (!%p244_p9), 0  }
  0x12   : > { %872 = vmatpush3.bf16.msra.mxu1 (!%p244_p9), %v978_v1  ;;  %v812_v31 = vld [vmem:[%s1275_s2] ss:$0 sm:$0xff] (!%p244_p9)  ;;  %s272_s23 = sand.u32 (!%p244_p9), 1, %s1038_s27   ;;  %s1231_s9 = scalar_lea.hbm (!%p244_p9), %s1280_s7, %s1143_s16 }
  0x13   : > { %873 = vmatprep.subr.bf16.mxu1 (!%p244_p9), %v979_v2  ;;  %s273_s24 = scalar_lea.vmem (!%p244_p9), [#allocation3], %s272_s23  ;;  %s739_s10 = scalar_lea.sflag (!%p244_p9), [#allocation4], %s272_s23 }
  0x14   : > { %s1051_s15 = smov (!%p244_p9), [#allocation3]  }
  0x15   : > { %s988_s17 = sshll.u32 (!%p244_p9), %s1051_s15, 4  ;;  %s989_s17 = int_to_ptr.vmem [resolvable:$false] %s988_s17 }
  0x16   : > { %874 = vmatpush3.bf16.msra.mxu1 (!%p244_p9), %v979_v2  ;;  %s990_s18 = scalar_lea.vmem (!%p244_p9), %s989_s17, 32 }
  0x17   : > { %891 = vmatprep.subr.bf16.mxu1 (!%p244_p9), %v980_v3 }
  0x18   : > { %s276_s19 = scalar_select %p275_p10, %s1143_s16, 31 }
  0x1a   : > { %s811_s22 = sshll.u32 %s276_s19, 3 }
  0x1b   : > { %s1156_s25 = scalar_lea.vmem %s1273_s0, %s811_s22 }
  0x1c   : > { %v281_v4 = vld [vmem:[%s1156_s25] sm:$0xff]  ;;  %v282_v5 = vld [vmem:[%s1156_s25 + $0x8] sm:$0xff]  ;;  %v283_v6 = vld [vmem:[%s1156_s25 + $0x10] sm:$0xff] }
  0x1d   : > { %v297_v7 = vpack.c.bf16 %v282_v5, %v281_v4  ;;  %v284_v8 = vld [vmem:[%s1156_s25 + $0x18] sm:$0xff]  ;;  %v285_v9 = vld [vmem:[%s1156_s25 + $0x20] sm:$0xff]  ;;  %v286_v10 = vld [vmem:[%s1156_s25 + $0x28] sm:$0xff] }
  0x1e   : > { %v298_v11 = vpack.c.bf16 %v284_v8, %v283_v6  ;;  %v299_v12 = vpack.c.bf16 %v286_v10, %v285_v9  ;;  %v287_v14 = vld [vmem:[%s1156_s25 + $0x30] sm:$0xff]  ;;  %v288_v15 = vld [vmem:[%s1156_s25 + $0x38] sm:$0xff]  ;;  %v289_v16 = vld [vmem:[%s1156_s25 + $0x40] sm:$0xff] }
  0x1f   : > { %875 = vmatprep.mubr.msk.bf16.mxu1 %vm328_vm0, %v297_v7  ;;  %v290_v17 = vld [vmem:[%s1156_s25 + $0x48] sm:$0xff]  ;;  %v300_v19 = vpack.c.bf16 %v288_v15, %v287_v14  ;;  %v291_v21 = vld [vmem:[%s1156_s25 + $0x50] sm:$0xff]  ;;  %v292_v22 = vld [vmem:[%s1156_s25 + $0x58] sm:$0xff] }
  0x20   : > { %876 = vmatmul.mubr.msk.bf16.vlgmr.msra.gmra.mrb[0].mxu1 %vm328_vm0, %v298_v11  ;;  %v301_v20 = vpack.c.bf16 %v290_v17, %v289_v16  ;;  %v293_v23 = vld [vmem:[%s1156_s25 + $0x60] sm:$0xff]  ;;  %v294_v24 = vld [vmem:[%s1156_s25 + $0x68] sm:$0xff]  ;;  %v302_v25 = vpack.c.bf16 %v292_v22, %v291_v21  ;;  %v295_v27 = vld [vmem:[%s1156_s25 + $0x70] sm:$0xff] }
  0x21   : > { %879 = vmatprep.mubr.msk.bf16.mxu1 %vm328_vm0, %v299_v12  ;;  %892 = vmatpush3.bf16.msra.mxu1 %v980_v3  ;;  %v303_v26 = vpack.c.bf16 %v294_v24, %v293_v23  ;;  %v296_v28 = vld [vmem:[%s1156_s25 + $0x78] sm:$0xff]  ;;  %v1048_v24 = vmov 0.0   ;;  %s751_s25 = sshll.u32 %s273_s24, 4  ;;  %s1233_s25 = int_to_ptr.vmem [resolvable:$true] %s751_s25 }
  0x22   : > { %893 = vmatprep.subr.bf16.mxu1 %v981_v13  ;;  %v304_v29 = vpack.c.bf16 %v296_v28, %v295_v27  ;;  %915 = vmatprep.subr.bf16.mxu0 %v1048_v24  ;;  %v823_v27 = vld [vmem:[%s1277_s4] ss:$0 sm:$0xff]  ;;  %s984_s14 = scalar_lea.vmem %s1233_s25, 16  ;;  %p991_p0 = scmp.lt.s32.totalorder %s1233_s25, %s989_s17 }
  0x23   : > { %931 = vmatprep.mubr.msk.bf16.mxu0 %vm1049_vm2, %v1048_v24  ;;  %p985_p11 = scmp.ne.s32.totalorder %s1233_s25, %s984_s14  ;;  %p992_p1 = scmp.lt.s32.totalorder %s990_s18, %s984_s14 }
  0x25   : > { %894 = vmatpush3.bf16.msra.mxu1 %v981_v13  ;;  %p986_p12 = pnand %p985_p11, %p1130_p5  ;;  %p993_p2 = por %p992_p1, %p991_p0 }
  0x26   : > { %895 = vmatprep.subr.bf16.mxu1 %v982_v18 }
  0x27   : > { %p987_p13 = pneg %p986_p12 }
  0x28   : > { %880 = vmatmul.mubr.msk.bf16.gmra.mrb[4].mxu1 %vm328_vm0, %v300_v19 }
  0x29   : > { %883 = vmatprep.mubr.msk.bf16.mxu1 %vm328_vm0, %v301_v20  ;;  %896 = vmatpush3.bf16.msra.mxu1 %v982_v18  ;;  %p994_p3 = pnand %p993_p2, %p987_p13 }
  0x2a   : > { %897 = vmatprep.subr.bf16.mxu1 %v983_v30 }
  0x2d   : > { %898 = vmatpush3.bf16.msra.mxu1 %v983_v30 }
  0x30   : > { %884 = vmatmul.mubr.msk.bf16.gmra.mrb[8].mxu1 %vm328_vm0, %v302_v25  ;;  %v660_v25 = vld [vmem:[#allocation2] sm:$0x1] }
  0x31   : > { %887 = vmatprep.mubr.msk.bf16.mxu1 %vm328_vm0, %v303_v26  ;;  %v1050_v26 = vmov 0  }
  0x32   : > { %977 = vset.pattern.permute.xlu0 %v1050_v26 }
  0x33   : > { %663 = vperm.xlu0 %977, %v660_v25  }
  0x38   : > { %888 = vmatmul.mubr.msk.bf16.gmra.mrb[12].mxu1 %vm328_vm0, %v304_v29 }
  0xf3   : > { %v877_v32 = vpop.f32.mrb[0].mxu1 }
  0xf4   : > { %v396_v33 = vadd.f32 %v877_v32, %v812_v31  ;;  %v387_v34 = vpop.f32.mrb[1].mxu1 }
  0xf5   : > { %v388_v35 = vadd.f32 %v812_v31, %v387_v34  ;;  %v878_v36 = vpop.f32.mrb[2].mxu1 }
  0xf6   : > { %v399_v37 = vadd.f32 %v878_v36, %v812_v31  ;;  %v390_v38 = vpop.f32.mrb[3].mxu1  ;;  %v452_v40 = vmax.f32 %v396_v33, 0.0 }
  0xf7   : > { %v391_v39 = vadd.f32 %v812_v31, %v390_v38  ;;  %v450_v42 = vmax.f32 %v388_v35, 0.0 }
  0xf8   : > { %v453_v41 = vmax.f32 %v399_v37, 0.0 }
  0xf9   : > { %v451_v43 = vmax.f32 %v391_v39, 0.0 }
  0xfa   : > { %v467_v44 = vpack.c.bf16 %v453_v41, %v452_v40 }
  0xfb   : > { %v466_v45 = vpack.c.bf16 %v451_v43, %v450_v42  ;;  %v881_v46 = vpop.f32.mrb[4].mxu1 }
  0xfc   : > { %v412_v47 = vadd.f32 %v881_v46, %v812_v31  ;;  %v403_v48 = vpop.f32.mrb[5].mxu1 }
  0xfd   : > { %v404_v49 = vadd.f32 %v812_v31, %v403_v48  ;;  %899 = vmatprep.mubr.msk.bf16.mxu1 %vm513_vm1, %v466_v45  ;;  %v882_v50 = vpop.f32.mrb[6].mxu1 }
  0xfe   : > { %v456_v51 = vmax.f32 %v412_v47, 0.0  ;;  %v415_v52 = vadd.f32 %v882_v50, %v812_v31  ;;  %900 = vmatmul.mubr.msk.bf16.vlgmr.msra.gmra.mrb[16].mxu1 %vm513_vm1, %v467_v44  ;;  %v406_v53 = vpop.f32.mrb[7].mxu1 }
  0xff   : > { %v454_v54 = vmax.f32 %v404_v49, 0.0  ;;  %v407_v55 = vadd.f32 %v812_v31, %v406_v53 }
 0x100   : > { %v457_v56 = vmax.f32 %v415_v52, 0.0 }
 0x101   : > { %v455_v57 = vmax.f32 %v407_v55, 0.0 }
 0x102   : > { %v469_v58 = vpack.c.bf16 %v457_v56, %v456_v51 }
 0x103   : > { %v468_v59 = vpack.c.bf16 %v455_v57, %v454_v54  ;;  %v885_v60 = vpop.f32.mrb[8].mxu1 }
 0x104   : > { %v428_v61 = vadd.f32 %v885_v60, %v812_v31  ;;  %v419_v62 = vpop.f32.mrb[9].mxu1 }
 0x105   : > { %903 = vmatprep.mubr.msk.bf16.mxu1 %vm513_vm1, %v468_v59  ;;  %v420_v63 = vadd.f32 %v812_v31, %v419_v62  ;;  %v886_v0 = vpop.f32.mrb[10].mxu1 }
 0x106   : > { %904 = vmatmul.mubr.msk.bf16.gmra.mrb[20].mxu1 %vm513_vm1, %v469_v58  ;;  %v460_v1 = vmax.f32 %v428_v61, 0.0  ;;  %v431_v2 = vadd.f32 %v886_v0, %v812_v31  ;;  %v422_v3 = vpop.f32.mrb[11].mxu1 }
 0x107   : > { %v458_v4 = vmax.f32 %v420_v63, 0.0  ;;  %v423_v5 = vadd.f32 %v812_v31, %v422_v3 }
 0x108   : > { %v461_v6 = vmax.f32 %v431_v2, 0.0 }
 0x109   : > { %v459_v7 = vmax.f32 %v423_v5, 0.0 }
 0x10a   : > { %v471_v8 = vpack.c.bf16 %v461_v6, %v460_v1 }
 0x10b   : > { %v470_v9 = vpack.c.bf16 %v459_v7, %v458_v4  ;;  %v889_v10 = vpop.f32.mrb[12].mxu1 }
 0x10c   : > { %v444_v11 = vadd.f32 %v889_v10, %v812_v31  ;;  %v435_v12 = vpop.f32.mrb[13].mxu1 }
 0x10d   : > { %907 = vmatprep.mubr.msk.bf16.mxu1 %vm513_vm1, %v470_v9  ;;  %v436_v13 = vadd.f32 %v812_v31, %v435_v12  ;;  %v890_v14 = vpop.f32.mrb[14].mxu1 }
 0x10e   : > { %908 = vmatmul.mubr.msk.bf16.gmra.mrb[24].mxu1 %vm513_vm1, %v471_v8  ;;  %v464_v15 = vmax.f32 %v444_v11, 0.0  ;;  %v447_v16 = vadd.f32 %v890_v14, %v812_v31  ;;  %v438_v17 = vpop.f32.mrb[15].mxu1 }
 0x10f   : > { %v462_v18 = vmax.f32 %v436_v13, 0.0  ;;  %v439_v19 = vadd.f32 %v812_v31, %v438_v17 }
 0x110   : > { %v465_v20 = vmax.f32 %v447_v16, 0.0 }
 0x111   : > { %v463_v21 = vmax.f32 %v439_v19, 0.0 }
 0x112   : > { %v473_v22 = vpack.c.bf16 %v465_v20, %v464_v15 }
 0x113   : > { %v472_v23 = vpack.c.bf16 %v463_v21, %v462_v18 }
 0x115   : > { %911 = vmatprep.mubr.msk.bf16.mxu1 %vm513_vm1, %v472_v23 }
 0x116   : > { %912 = vmatmul.mubr.msk.bf16.gmra.mrb[28].mxu1 %vm513_vm1, %v473_v22 }
 0x1d1   : > { %v901_v28 = vpop.f32.mrb[16].mxu1 }
 0x1d2   : > { %v581_v29 = vadd.f32 %v901_v28, %v823_v27  ;;  %v572_v30 = vpop.f32.mrb[17].mxu1 }
 0x1d3   : > { %v573_v31 = vadd.f32 %v823_v27, %v572_v30  ;;  %v902_v32 = vpop.f32.mrb[18].mxu1  ;;  %v666_v30 = vlaneseq }
 0x1d4   : > { %v584_v33 = vadd.f32 %v902_v32, %v823_v27  ;;  %v575_v34 = vpop.f32.mrb[19].mxu1  ;;  %v637_v36 = vmax.f32 %v581_v29, 0.0  ;;  %v651_v29 = vld [vmem:[%s1278_s5] sm:$0x1] }
 0x1d5   : > { %v576_v35 = vadd.f32 %v823_v27, %v575_v34  ;;  %v635_v38 = vmax.f32 %v573_v31, 0.0  ;;  %v667_v31 = vshrl.u32 %v666_v30, 7 }
 0x1d6   : > { %v638_v37 = vmax.f32 %v584_v33, 0.0  ;;  %v664_v33 = vpop.permute.xlu0 %663 }
 0x1d7   : > { %v636_v39 = vmax.f32 %v576_v35, 0.0  ;;  %v668_v32 = vsub.s32 0, %v667_v31 }
 0x1d8   : > { %v653_v40 = vpack.c.bf16 %v638_v37, %v637_v36 }
 0x1d9   : > { %v905_v41 = vpop.f32.mrb[20].mxu1  ;;  %v652_v42 = vpack.c.bf16 %v636_v39, %v635_v38  ;;  %v669_v34 = vrot.slane %v664_v33, %v668_v32 }
 0x1da   : > { %v597_v43 = vadd.f32 %v905_v41, %v823_v27  ;;  %v588_v44 = vpop.f32.mrb[21].mxu1  ;;  %v677_v60 = vsel %vm328_vm0, %v653_v40, 0 }
 0x1db   : > { %v589_v45 = vadd.f32 %v823_v27, %v588_v44  ;;  %v906_v46 = vpop.f32.mrb[22].mxu1  ;;  %v674_v47 = vsel %vm328_vm0, %v652_v42, 0 }
 0x1dc   : > { %v641_v48 = vmax.f32 %v597_v43, 0.0  ;;  %v600_v49 = vadd.f32 %v906_v46, %v823_v27  ;;  %916 = vmatpush3.bf16.xpose.msra.mxu0 %v674_v47  ;;  %v591_v50 = vpop.f32.mrb[23].mxu1 }
 0x1dd   : > { %v639_v51 = vmax.f32 %v589_v45, 0.0  ;;  %v592_v52 = vadd.f32 %v823_v27, %v591_v50  ;;  %917 = vmatprep.subr.bf16.mxu0 %v1048_v24 }
 0x1de   : > { %v642_v53 = vmax.f32 %v600_v49, 0.0 }
 0x1df   : > { %v640_v54 = vmax.f32 %v592_v52, 0.0 }
 0x1e0   : > { %v655_v55 = vpack.c.bf16 %v642_v53, %v641_v48 }
 0x1e1   : > { %v654_v56 = vpack.c.bf16 %v640_v54, %v639_v51  ;;  %v909_v57 = vpop.f32.mrb[24].mxu1 }
 0x1e2   : > { %v613_v58 = vadd.f32 %v909_v57, %v823_v27  ;;  %v604_v59 = vpop.f32.mrb[25].mxu1  ;;  %v683_v23 = vsel %vm328_vm0, %v655_v55, 0 }
 0x1e3   : > { %v605_v61 = vadd.f32 %v823_v27, %v604_v59  ;;  %v910_v62 = vpop.f32.mrb[26].mxu1  ;;  %v680_v11 = vsel %vm328_vm0, %v654_v56, 0 }
 0x1e4   : > { %918 = vmatpush3.bf16.xpose.msra.mxu0 %v677_v60  ;;  %v645_v63 = vmax.f32 %v613_v58, 0.0  ;;  %v616_v0 = vadd.f32 %v910_v62, %v823_v27  ;;  %v607_v1 = vpop.f32.mrb[27].mxu1 }
 0x1e5   : > { %v643_v2 = vmax.f32 %v605_v61, 0.0  ;;  %919 = vmatprep.subr.bf16.mxu0 %v1048_v24  ;;  %v608_v3 = vadd.f32 %v823_v27, %v607_v1 }
 0x1e6   : > { %v646_v4 = vmax.f32 %v616_v0, 0.0 }
 0x1e7   : > { %v644_v5 = vmax.f32 %v608_v3, 0.0 }
 0x1e8   : > { %v657_v6 = vpack.c.bf16 %v646_v4, %v645_v63 }
 0x1e9   : > { %v656_v7 = vpack.c.bf16 %v644_v5, %v643_v2  ;;  %v913_v8 = vpop.f32.mrb[28].mxu1 }
 0x1ea   : > { %v629_v9 = vadd.f32 %v913_v8, %v823_v27  ;;  %v620_v10 = vpop.f32.mrb[29].mxu1  ;;  %v689_v26 = vsel %vm328_vm0, %v657_v6, 0 }
 0x1eb   : > { %v621_v12 = vadd.f32 %v823_v27, %v620_v10  ;;  %v914_v13 = vpop.f32.mrb[30].mxu1  ;;  %v686_v25 = vsel %vm328_vm0, %v656_v7, 0 }
 0x1ec   : > { %920 = vmatpush3.bf16.xpose.msra.mxu0 %v680_v11  ;;  %v649_v14 = vmax.f32 %v629_v9, 0.0  ;;  %v632_v15 = vadd.f32 %v914_v13, %v823_v27  ;;  %v623_v16 = vpop.f32.mrb[31].mxu1 }
 0x1ed   : > { %921 = vmatprep.subr.bf16.mxu0 %v1048_v24  ;;  %v647_v17 = vmax.f32 %v621_v12, 0.0  ;;  %v624_v18 = vadd.f32 %v823_v27, %v623_v16 }
 0x1ee   : > { %v650_v19 = vmax.f32 %v632_v15, 0.0 }
 0x1ef   : > { %v648_v20 = vmax.f32 %v624_v18, 0.0 }
 0x1f0   : > { %v659_v21 = vpack.c.bf16 %v650_v19, %v649_v14 }
 0x1f1   : > { %v658_v22 = vpack.c.bf16 %v648_v20, %v647_v17 }
 0x1f2   : > { %v695_v28 = vsel %vm328_vm0, %v659_v21, 0 }
 0x1f3   : > { %v692_v27 = vsel %vm328_vm0, %v658_v22, 0 }
 0x1f4   : > { %922 = vmatpush3.bf16.xpose.msra.mxu0 %v683_v23 }
 0x1f5   : > { %923 = vmatprep.subr.bf16.mxu0 %v1048_v24 }
 0x1fc   : > { %924 = vmatpush3.bf16.xpose.msra.mxu0 %v686_v25 }
 0x1fd   : > { %925 = vmatprep.subr.bf16.mxu0 %v1048_v24 }
 0x204   : > { %926 = vmatpush3.bf16.xpose.msra.mxu0 %v689_v26 }
 0x205   : > { %927 = vmatprep.subr.bf16.mxu0 %v1048_v24 }
 0x20c   : > { %928 = vmatpush3.bf16.xpose.msra.mxu0 %v692_v27 }
 0x20d   : > { %929 = vmatprep.subr.bf16.mxu0 %v1048_v24 }
 0x214   : > { %930 = vmatpush3.bf16.xpose.msra.mxu0 %v695_v28 }
 0x21b   : > { %932 = vmatmul.mubr.msk.bf16.vlgmr.msra.gmra.mrb[0].mxu0 %vm328_vm0, %v651_v29 }
 0x2ee   : > { %v731_v24 = vpop.f32.mrb[0].mxu0 }
 0x2ef   : > { %v732_v35 = vadd.f32 %v731_v24, %v669_v34  ;;  %v933_v36 = vpop.f32.mrb[1].mxu0 }
 0x2f0   : > { %v734_v37 = vpop.f32.mrb[2].mxu0 }
 0x2f1   : > { %737 = vst [vmem:[%s273_s24] sm:$0x1] %v732_v35  ;;  %v934_v38 = vpop.f32.mrb[3].mxu0 }
 0x2f2   : > { %997 = shalt.err (!%p994_p3)
}
 0x2f3   : > { %s998_s16 = scalar_lea.hbm %s1231_s9, 16  ;;  %s1002_s21 = scalar_lea.hbm %s1280_s7, 32 }
 0x2f4   : > { %p999_p4 = scmp.ne.s32.totalorder %s1231_s9, %s998_s16  ;;  %p1003_p9 = scmp.lt.u32.totalorder %s1231_s9, %s1280_s7 }
 0x2f5   : > { %p1004_p10 = scmp.lt.u32.totalorder %s1002_s21, %s998_s16  ;;  %p1006_p12 = scmp.lt.u32.totalorder %s998_s16, %s1231_s9 }
 0x2f6   : > { %p1000_p7 = pnand %p999_p4, %p1130_p5 }
 0x2f7   : > { %p1005_p11 = por %p1004_p10, %p1003_p9 }
 0x2f8   : > { %p1001_p8 = pneg %p1000_p7 }
 0x2f9   : > { %p1007_p13 = por %p1006_p12, %p1005_p11 }
 0x2fb   : > { %p1008_p0 = pnand %p1007_p13, %p1001_p8 }
 0x2fd   : > { %1011 = shalt.err (!%p1008_p0)
}
 0x2fe   : > { %935 = dma.vmem_to_hbm [thread:$0]  (%p1130_p5), %s1233_s25, 16, %s1231_s9, %s739_s10  }
 0x2ff PF: > { %p941_p1 = scmp.ge.s32.totalorder %s1046_s29, 2  ;;  %s763_s24 = sand.u32 1, %s1034_s26  }
 0x300   : > { %s764_s6 = scalar_lea.sflag [#allocation4], %s763_s24 }
 0x301   : > { %p938_p2 = pnand %p941_p1, %p1134_p6 }
 0x303   : > { %1029 = dma.done.wait (!%p938_p2), %s764_s6, 16  }
 0x304   : > { %1031 = vsyncadd (!%p938_p2), %s764_s6, 4294967280  ;;  %p19_p3 = scmp.ge.s32.totalorder %s1118_s8, 4   ;;  %s1283_s26 = smov %s1038_s27 }
 0x305   : > { %s1284_s27 = smov %s1042_s28  ;;  %s1285_s28 = smov %s1128_s11 }
 0x306   : > { %s1286_s29 = smov %s1118_s8  ;;  %21 = sbr.rel (!%p19_p3) target bundleno = 6 (0x6), region = 83 }
 0x30d   :  { %768 = vsyncpa [#allocation4], 1 }
 0x30e   :  { %770 = vsyncpa [#allocation4 + $0x1], 1 }

</bundles_post_ra>
